<compile_context>
chip_gen: v6e
topology: v6e:2x2x1
jax: 0.10.0
libtpu: 0.0.40
codegen_flags: <defaults>
</compile_context>

<pallas_src>
import numpy as np
import jax
import jax.numpy as jnp
from jax.experimental import pallas as pl
from jax.experimental.pallas import tpu as pltpu

# ----- model hyperparameters (small, but internally consistent) -----
INPUT_DIM = 32
OUTPUT_DIM = 4
SIGN_SIZE = 16
CHA_INPUT = 8
CHA_HIDDEN = 16
K = 2
BATCH = 4

HIDDEN = SIGN_SIZE * CHA_INPUT        # dense1 output = 128
L1 = SIGN_SIZE                        # 16
L2 = SIGN_SIZE // 2                   # 8
L4 = SIGN_SIZE // 4                   # 4
CK = CHA_INPUT * K                    # 16
OUTPUT_SIZE = L4 * CHA_HIDDEN         # 64
CH_L2 = CHA_HIDDEN * L2               # 128 (conv-stage feature width)
CK_L1 = CK * L1                       # 256
BN_EPS = 1e-5
OUT_PAD = 128                         # lane-dense output slab; real cols are [:OUTPUT_DIM]
BIAS_ROWS, BIAS_COLS = 8, 256         # packed bias slab


def _round_up(x, m):
    return ((x + m - 1) // m) * m


# ---------------------------------------------------------------------------
# Pallas kernel: 6 bf16 MXU dots + f32 elementwise, lane-dense (B, C*L) layout
# ---------------------------------------------------------------------------
def biomass_kernel(x_ref, w1_ref, m1_ref, m2_ref, m3_ref, m4_ref, wf_ref,
                   bias_ref, out_ref):
    f32 = jnp.float32
    bf16 = jnp.bfloat16

    # packed biases (f32): row 0 = dense1, 1 = conv1, 2 = conv2, 3 = conv3,
    # 4 = conv4, 5 = dense2 (padded to 128 lanes).
    b1 = bias_ref[0:1, 0:HIDDEN]
    bb1 = bias_ref[1:2, 0:CK_L1]
    bb2 = bias_ref[2:3, 0:CH_L2]
    bb3 = bias_ref[3:4, 0:CH_L2]
    bb4 = bias_ref[4:5, 0:CH_L2]
    bf = bias_ref[5:6, 0:OUT_PAD]

    x = x_ref[...].astype(bf16)

    # --- BN1 (folded) + Dropout(id) + dense1 + CELU(alpha=1) ---
    h = jnp.dot(x, w1_ref[...], preferred_element_type=f32) + b1
    h = jnp.where(h > 0.0, h, jnp.exp(jnp.minimum(h, 0.0)) - 1.0)

    # --- BN_c1 + depthwise conv1 (k=5,p=2,groups=C_in)  [one banded matmul] + ReLU
    z = jnp.maximum(
        jnp.dot(h.astype(bf16), m1_ref[...], preferred_element_type=f32) + bb1, 0.0)

    # --- AdaptiveAvgPool(16->8) + BN_c2 + Dropout(id) + conv2 (k=3,p=1)  [folded] + ReLU
    z = jnp.maximum(
        jnp.dot(z.astype(bf16), m2_ref[...], preferred_element_type=f32) + bb2, 0.0)
    skip = z

    # --- BN_c3 + Dropout(id) + conv3 (k=3,p=1)  [folded] + ReLU
    z = jnp.maximum(
        jnp.dot(z.astype(bf16), m3_ref[...], preferred_element_type=f32) + bb3, 0.0)

    # --- BN_c4 + depthwise conv4 (k=5,p=2)  [folded] + residual + ReLU
    z = jnp.dot(z.astype(bf16), m4_ref[...], preferred_element_type=f32) + bb4 + skip
    z = jnp.maximum(z, 0.0)

    # --- AvgPool1d(4,2,1) + Flatten + BN2 + Dropout(id) + dense2  [folded] + sigmoid
    logits = jnp.dot(z.astype(bf16), wf_ref[...], preferred_element_type=f32) + bf
    sig = pl.reciprocal(1.0 + jnp.exp(-logits), approx=True)
    lane = jax.lax.broadcasted_iota(jnp.int32, logits.shape, 1)
    out_ref[...] = jnp.where(lane < OUTPUT_DIM, sig, 0.0)   # zero padded lanes


def biomass_predictor(x, kp):
    B, D = x.shape

    # batch-tile selection: multiple of 8, capped at 512, and for B >= 16 also
    # capped at ~B/2 so the grid always has >= 2 steps (v7x megacore sharding).
    if B < 16:
        bt = _round_up(B, 8)
    else:
        bt = min(512, _round_up((B + 1) // 2, 8))
    B_pad = _round_up(B, bt)
    grid = (B_pad // bt,)

    xp = x if B_pad == B else jnp.pad(x, ((0, B_pad - B), (0, 0)))

    weights = (kp['w1'], kp['m1'], kp['m2'], kp['m3'], kp['m4'], kp['wf'], kp['bias'])

    x_spec = pl.BlockSpec((bt, D), lambda i: (i, 0))
    w_specs = [pl.BlockSpec(w.shape, lambda i: (0, 0)) for w in weights]  # resident
    out_spec = pl.BlockSpec((bt, OUT_PAD), lambda i: (i, 0))

    full = pl.pallas_call(
        biomass_kernel,
        out_shape=jax.ShapeDtypeStruct((B_pad, OUT_PAD), jnp.float32),
        grid=grid,
        in_specs=[x_spec] + w_specs,
        out_specs=out_spec,
        compiler_params=pltpu.CompilerParams(dimension_semantics=("parallel",)),
    )(xp, *weights)
    # jit this wrapper so pad + slice fuse with the kernel call
    return full[:B, :OUTPUT_DIM]


# ---------------------------------------------------------------------------
# deterministic parameter construction (mirrors the module's __init__ shapes)
# ---------------------------------------------------------------------------
def make_params(key):
    ks = iter(jax.random.split(key, 40))

    def nrm(shape, scale=0.1):
        return scale * jax.random.normal(next(ks), shape, jnp.float32)

    def uni(shape, lo=0.5, hi=1.5):
        return jax.random.uniform(next(ks), shape, jnp.float32, lo, hi)

    def bn_params(n):
        return dict(gamma=uni((n,)), beta=nrm((n,)), rm=nrm((n,)), rv=uni((n,)))

    def wn_dim0(v, g):        # nn.utils.weight_norm default (dim=0)
        nn_ = jnp.sqrt(jnp.sum(v * v, axis=tuple(range(1, v.ndim)), keepdims=True))
        return g.reshape((-1,) + (1,) * (v.ndim - 1)) * v / nn_

    def wn_none(v, g):        # nn.utils.weight_norm(dim=None): scalar g
        return g * v / jnp.sqrt(jnp.sum(v * v))

    p = {}
    p['bn1'] = bn_params(INPUT_DIM)
    p['W1'] = wn_dim0(nrm((HIDDEN, INPUT_DIM)), uni((HIDDEN,)))
    p['bn_c1'] = bn_params(CHA_INPUT)
    p['Wc1'] = wn_none(nrm((CK, 1, 5)), uni(()))
    p['bn_c2'] = bn_params(CK)
    p['Wc2'] = wn_none(nrm((CHA_HIDDEN, CK, 3)), uni(()))
    p['bn_c3'] = bn_params(CHA_HIDDEN)
    p['Wc3'] = wn_none(nrm((CHA_HIDDEN, CHA_HIDDEN, 3)), uni(()))
    p['bn_c4'] = bn_params(CHA_HIDDEN)
    p['Wc4'] = wn_none(nrm((CHA_HIDDEN, 1, 5)), uni(()))
    p['bn2'] = bn_params(OUTPUT_SIZE)
    p['W2'] = wn_dim0(nrm((OUTPUT_DIM, OUTPUT_SIZE)), uni((OUTPUT_DIM,)))
    return p


# ---------------------------------------------------------------------------
# fold_params: build block-banded matmul weights in the (B, C*L) layout.
# Feature index everywhere is c*L + l (PyTorch's reshape/flatten order), so no
# in-kernel permutation is needed.  Pooling and BN are folded into the weight
# of the following linear stage; conv zero-padding is encoded in the banded
# matrices (so BN bias contributions at the edges are exact).  Matmul weights
# are stored in bf16; biases stay f32 and are packed into one (8,256) slab.
# ---------------------------------------------------------------------------
def _conv1d_matrix(w, L, pad, groups):
    """Dense matrix of a stride-1 Conv1d: (C_in*L, C_out*L), index = c*L + l."""
    w = np.asarray(w, np.float32)
    c_out, cin_g, kk = w.shape
    out_per_g = c_out // groups
    M = np.zeros((cin_g * groups * L, c_out * L), np.float32)
    for o in range(c_out):
        g = o // out_per_g
        for cig in range(cin_g):
            ci = g * cin_g + cig
            for k in range(kk):
                for lo in range(L):
                    li = lo + k - pad
                    if 0 <= li < L:
                        M[ci * L + li, o * L + lo] += w[o, cig, k]
    return M


def _adaptive_pool_matrix(c, l_in, l_out):
    r = l_in // l_out
    P = np.zeros((c * l_in, c * l_out), np.float32)
    for ch in range(c):
        for lo in range(l_out):
            for j in range(r):
                P[ch * l_in + lo * r + j, ch * l_out + lo] = 1.0 / r
    return P


def _avgpool_matrix(c, l_in, l_out, k, stride, pad):
    # count_include_pad=True -> denominator is always k
    P = np.zeros((c * l_in, c * l_out), np.float32)
    for ch in range(c):
        for lo in range(l_out):
            for j in range(k):
                li = lo * stride + j - pad
                if 0 <= li < l_in:
                    P[ch * l_in + li, ch * l_out + lo] += 1.0 / k
    return P


def fold_params(p):
    def bn_sb(d):
        s = np.asarray(d['gamma'], np.float64) / np.sqrt(np.asarray(d['rv'], np.float64) + BN_EPS)
        b = np.asarray(d['beta'], np.float64) - np.asarray(d['rm'], np.float64) * s
        return s.astype(np.float32), b.astype(np.float32)

    kp = {}
    bias = np.zeros((BIAS_ROWS, BIAS_COLS), np.float32)

    # stage 1: BN1 folded into dense1 (dense1 has no bias)
    s1, b1 = bn_sb(p['bn1'])
    W1 = np.asarray(p['W1'], np.float32)                        # (HIDDEN, INPUT_DIM)
    kp['w1'] = jnp.asarray(s1[:, None] * W1.T, jnp.bfloat16)    # (INPUT_DIM, HIDDEN)
    bias[0, :HIDDEN] = b1 @ W1.T

    # stage 2: BN_c1 + depthwise conv1 (k=5, p=2, groups=CHA_INPUT)
    s, b = bn_sb(p['bn_c1'])
    M1 = _conv1d_matrix(p['Wc1'], L1, pad=2, groups=CHA_INPUT)  # (CHA_INPUT*L1, CK*L1)
    sf, bv = np.repeat(s, L1), np.repeat(b, L1)
    kp['m1'] = jnp.asarray(sf[:, None] * M1, jnp.bfloat16)      # (128, 256)
    bias[1, :CK_L1] = bv @ M1

    # stage 3: adaptive avg pool (16->8) + BN_c2 + conv2 (k=3, p=1)
    s, b = bn_sb(p['bn_c2'])
    P1 = _adaptive_pool_matrix(CK, L1, L2)                      # (CK*L1, CK*L2)
    M2 = _conv1d_matrix(p['Wc2'], L2, pad=1, groups=1)          # (CK*L2, CH*L2)
    sf, bv = np.repeat(s, L2), np.repeat(b, L2)
    kp['m2'] = jnp.asarray(P1 @ (sf[:, None] * M2), jnp.bfloat16)   # (256, 128)
    bias[2, :CH_L2] = bv @ M2

    # stage 4: BN_c3 + conv3 (k=3, p=1)
    s, b = bn_sb(p['bn_c3'])
    M3 = _conv1d_matrix(p['Wc3'], L2, pad=1, groups=1)          # (CH*L2, CH*L2)
    sf, bv = np.repeat(s, L2), np.repeat(b, L2)
    kp['m3'] = jnp.asarray(sf[:, None] * M3, jnp.bfloat16)      # (128, 128)
    bias[3, :CH_L2] = bv @ M3

    # stage 5: BN_c4 + depthwise conv4 (k=5, p=2)
    s, b = bn_sb(p['bn_c4'])
    M4 = _conv1d_matrix(p['Wc4'], L2, pad=2, groups=CHA_HIDDEN)
    sf, bv = np.repeat(s, L2), np.repeat(b, L2)
    kp['m4'] = jnp.asarray(sf[:, None] * M4, jnp.bfloat16)      # (128, 128)
    bias[4, :CH_L2] = bv @ M4

    # stage 6: AvgPool1d(4,2,1) + flatten + BN2 + dense2, padded to 128 output lanes
    s, b = bn_sb(p['bn2'])
    P2 = _avgpool_matrix(CHA_HIDDEN, L2, L4, k=4, stride=2, pad=1)   # (CH*L2, CH*L4)
    W2 = np.asarray(p['W2'], np.float32)                             # (OUTPUT_DIM, 64)
    Wf = P2 @ (s[:, None] * W2.T)                                    # (128, OUTPUT_DIM)
    Wf_pad = np.zeros((Wf.shape[0], OUT_PAD), np.float32)
    Wf_pad[:, :OUTPUT_DIM] = Wf
    kp['wf'] = jnp.asarray(Wf_pad, jnp.bfloat16)                     # (128, 128)
    bias[5, :OUTPUT_DIM] = b @ W2.T

    kp['bias'] = jnp.asarray(bias)                                   # (8, 256) f32
    return kp


# ---------------------------------------------------------------------------
# independent pure-JAX reference (PyTorch eval-mode semantics, f32)
# ---------------------------------------------------------------------------
def reference_forward(x, p):
    def bn(x, d):
        shape = (1, -1) + (1,) * (x.ndim - 2)
        s = d['gamma'] / jnp.sqrt(d['rv'] + BN_EPS)
        return (x - d['rm'].reshape(shape)) * s.reshape(shape) + d['beta'].reshape(shape)

    def conv1d(x, w, pad, groups=1):
        return jax.lax.conv_general_dilated(
            x, w, window_strides=(1,), padding=[(pad, pad)],
            dimension_numbers=('NCH', 'OIH', 'NCH'), feature_group_count=groups)

    x = bn(x, p['bn1'])
    x = x @ p['W1'].T
    x = jnp.where(x > 0.0, x, jnp.exp(jnp.minimum(x, 0.0)) - 1.0)       # CELU
    x = x.reshape(x.shape[0], CHA_INPUT, L1)
    x = bn(x, p['bn_c1'])
    x = jax.nn.relu(conv1d(x, p['Wc1'], 2, groups=CHA_INPUT))
    x = 0.5 * (x[:, :, 0::2] + x[:, :, 1::2])                           # adaptive pool
    x = bn(x, p['bn_c2'])
    x = jax.nn.relu(conv1d(x, p['Wc2'], 1))
    x_s = x
    x = bn(x, p['bn_c3'])
    x = jax.nn.relu(conv1d(x, p['Wc3'], 1))
    x = bn(x, p['bn_c4'])
    x = conv1d(x, p['Wc4'], 2, groups=CHA_HIDDEN)
    x = jax.nn.relu(x + x_s)
    xp = jnp.pad(x, ((0, 0), (0, 0), (1, 1)))                           # AvgPool1d(4,2,1)
    x = 0.25 * (xp[:, :, 0:-3:2] + xp[:, :, 1:-2:2] + xp[:, :, 2:-1:2] + xp[:, :, 3::2])
    x = x.reshape(x.shape[0], -1)
    x = bn(x, p['bn2'])
    x = x @ p['W2'].T
    return jax.nn.sigmoid(x)


if __name__ == "__main__":
    key = jax.random.PRNGKey(0)
    kx, kparam = jax.random.split(key)
    x = jax.random.normal(kx, (BATCH, INPUT_DIM), jnp.float32)

    params = make_params(kparam)
    kernel_params = fold_params(params)

    fwd = jax.jit(biomass_predictor)          # pad + slice fuse with the kernel call
    out = jax.block_until_ready(fwd(x, kernel_params))
    ref = jax.block_until_ready(reference_forward(x, params))

    assert out.shape == (BATCH, OUTPUT_DIM)
    if not np.allclose(np.asarray(out), np.asarray(ref), rtol=2e-2, atol=5e-3):
        raise AssertionError(
            "kernel/reference mismatch, max abs diff = "
            f"{np.max(np.abs(np.asarray(out) - np.asarray(ref)))}")
    print("KERNEL_OK")
</pallas_src>

<mosaic_0001>
module attributes {stable_mosaic.version = 11 : i64} {
  func.func @biomass_kernel(%arg0: i32, %arg1: memref<8x32xf32, #tpu.memory_space<vmem>>, %arg2: memref<32x128xbf16, #tpu.memory_space<vmem>>, %arg3: memref<128x256xbf16, #tpu.memory_space<vmem>>, %arg4: memref<256x128xbf16, #tpu.memory_space<vmem>>, %arg5: memref<128x128xbf16, #tpu.memory_space<vmem>>, %arg6: memref<128x128xbf16, #tpu.memory_space<vmem>>, %arg7: memref<128x128xbf16, #tpu.memory_space<vmem>>, %arg8: memref<8x256xf32, #tpu.memory_space<vmem>>, %arg9: memref<8x128xf32, #tpu.memory_space<vmem>>) attributes {dimension_semantics = [#tpu.dimension_semantics<parallel>], iteration_bounds = array<i64: 1>, scalar_prefetch = 0 : i64, scratch_operands = 0 : i64, tpu.core_type = #tpu.core_type<tc>, window_params = [{transform_indices = @transform_0, window_bounds = array<i64: 8, 32>}, {pipeline_mode = #tpu.pipeline_mode<synchronous>, transform_indices = @transform_1, window_bounds = array<i64: 32, 128>}, {pipeline_mode = #tpu.pipeline_mode<synchronous>, transform_indices = @transform_2, window_bounds = array<i64: 128, 256>}, {pipeline_mode = #tpu.pipeline_mode<synchronous>, transform_indices = @transform_3, window_bounds = array<i64: 256, 128>}, {pipeline_mode = #tpu.pipeline_mode<synchronous>, transform_indices = @transform_4, window_bounds = array<i64: 128, 128>}, {pipeline_mode = #tpu.pipeline_mode<synchronous>, transform_indices = @transform_5, window_bounds = array<i64: 128, 128>}, {pipeline_mode = #tpu.pipeline_mode<synchronous>, transform_indices = @transform_6, window_bounds = array<i64: 128, 128>}, {pipeline_mode = #tpu.pipeline_mode<synchronous>, transform_indices = @transform_7, window_bounds = array<i64: 8, 256>}, {transform_indices = @transform_8, window_bounds = array<i64: 8, 128>}]} {
    %c0 = arith.constant 0 : index
    %c0_0 = arith.constant 0 : index
    %0 = vector.load %arg8[%c0, %c0_0] : memref<8x256xf32, #tpu.memory_space<vmem>>, vector<1x128xf32>
    %c1 = arith.constant 1 : index
    %c0_1 = arith.constant 0 : index
    %1 = vector.load %arg8[%c1, %c0_1] : memref<8x256xf32, #tpu.memory_space<vmem>>, vector<1x256xf32>
    %c2 = arith.constant 2 : index
    %c0_2 = arith.constant 0 : index
    %2 = vector.load %arg8[%c2, %c0_2] : memref<8x256xf32, #tpu.memory_space<vmem>>, vector<1x128xf32>
    %c3 = arith.constant 3 : index
    %c0_3 = arith.constant 0 : index
    %3 = vector.load %arg8[%c3, %c0_3] : memref<8x256xf32, #tpu.memory_space<vmem>>, vector<1x128xf32>
    %c4 = arith.constant 4 : index
    %c0_4 = arith.constant 0 : index
    %4 = vector.load %arg8[%c4, %c0_4] : memref<8x256xf32, #tpu.memory_space<vmem>>, vector<1x128xf32>
    %c5 = arith.constant 5 : index
    %c0_5 = arith.constant 0 : index
    %5 = vector.load %arg8[%c5, %c0_5] : memref<8x256xf32, #tpu.memory_space<vmem>>, vector<1x128xf32>
    %c0_6 = arith.constant 0 : index
    %c0_7 = arith.constant 0 : index
    %6 = vector.load %arg1[%c0_6, %c0_7] : memref<8x32xf32, #tpu.memory_space<vmem>>, vector<8x32xf32>
    %7 = arith.truncf %6 : vector<8x32xf32> to vector<8x32xbf16>
    %c0_8 = arith.constant 0 : index
    %c0_9 = arith.constant 0 : index
    %8 = vector.load %arg2[%c0_8, %c0_9] : memref<32x128xbf16, #tpu.memory_space<vmem>>, vector<32x128xbf16>
    %cst = arith.constant dense<0.000000e+00> : vector<8x128xf32>
    %9 = tpu.matmul %7, %8, %cst {dimension_numbers = #tpu.dot_dimension_numbers<[1], [0], [0], [1], [0, 0, 1, 1], [], []>} : vector<8x32xbf16>, vector<32x128xbf16>, vector<8x128xf32> -> vector<8x128xf32>
    %10 = vector.broadcast %0 : vector<1x128xf32> to vector<8x128xf32>
    %11 = arith.addf %9, %10 : vector<8x128xf32>
    %cst_10 = arith.constant 0.000000e+00 : f32
    %12 = vector.broadcast %cst_10 : f32 to vector<8x128xf32>
    %13 = arith.cmpf ogt, %11, %12 : vector<8x128xf32>
    %cst_11 = arith.constant 0.000000e+00 : f32
    %14 = vector.broadcast %cst_11 : f32 to vector<8x128xf32>
    %15 = arith.minimumf %11, %14 : vector<8x128xf32>
    %16 = math.exp %15 : vector<8x128xf32>
    %cst_12 = arith.constant 1.000000e+00 : f32
    %17 = vector.broadcast %cst_12 : f32 to vector<8x128xf32>
    %18 = arith.subf %16, %17 : vector<8x128xf32>
    %19 = arith.select %13, %11, %18 : vector<8x128xi1>, vector<8x128xf32>
    %20 = arith.truncf %19 : vector<8x128xf32> to vector<8x128xbf16>
    %c0_13 = arith.constant 0 : index
    %c0_14 = arith.constant 0 : index
    %21 = vector.load %arg3[%c0_13, %c0_14] : memref<128x256xbf16, #tpu.memory_space<vmem>>, vector<128x256xbf16>
    %cst_15 = arith.constant dense<0.000000e+00> : vector<8x256xf32>
    %22 = tpu.matmul %20, %21, %cst_15 {dimension_numbers = #tpu.dot_dimension_numbers<[1], [0], [0], [1], [0, 0, 1, 1], [], []>} : vector<8x128xbf16>, vector<128x256xbf16>, vector<8x256xf32> -> vector<8x256xf32>
    %23 = vector.broadcast %1 : vector<1x256xf32> to vector<8x256xf32>
    %24 = arith.addf %22, %23 : vector<8x256xf32>
    %cst_16 = arith.constant 0.000000e+00 : f32
    %25 = vector.broadcast %cst_16 : f32 to vector<8x256xf32>
    %26 = arith.maximumf %24, %25 : vector<8x256xf32>
    %27 = arith.truncf %26 : vector<8x256xf32> to vector<8x256xbf16>
    %c0_17 = arith.constant 0 : index
    %c0_18 = arith.constant 0 : index
    %28 = vector.load %arg4[%c0_17, %c0_18] : memref<256x128xbf16, #tpu.memory_space<vmem>>, vector<256x128xbf16>
    %cst_19 = arith.constant dense<0.000000e+00> : vector<8x128xf32>
    %29 = tpu.matmul %27, %28, %cst_19 {dimension_numbers = #tpu.dot_dimension_numbers<[1], [0], [0], [1], [0, 0, 1, 1], [], []>} : vector<8x256xbf16>, vector<256x128xbf16>, vector<8x128xf32> -> vector<8x128xf32>
    %30 = vector.broadcast %2 : vector<1x128xf32> to vector<8x128xf32>
    %31 = arith.addf %29, %30 : vector<8x128xf32>
    %cst_20 = arith.constant 0.000000e+00 : f32
    %32 = vector.broadcast %cst_20 : f32 to vector<8x128xf32>
    %33 = arith.maximumf %31, %32 : vector<8x128xf32>
    %34 = arith.truncf %33 : vector<8x128xf32> to vector<8x128xbf16>
    %c0_21 = arith.constant 0 : index
    %c0_22 = arith.constant 0 : index
    %35 = vector.load %arg5[%c0_21, %c0_22] : memref<128x128xbf16, #tpu.memory_space<vmem>>, vector<128x128xbf16>
    %cst_23 = arith.constant dense<0.000000e+00> : vector<8x128xf32>
    %36 = tpu.matmul %34, %35, %cst_23 {dimension_numbers = #tpu.dot_dimension_numbers<[1], [0], [0], [1], [0, 0, 1, 1], [], []>} : vector<8x128xbf16>, vector<128x128xbf16>, vector<8x128xf32> -> vector<8x128xf32>
    %37 = vector.broadcast %3 : vector<1x128xf32> to vector<8x128xf32>
    %38 = arith.addf %36, %37 : vector<8x128xf32>
    %cst_24 = arith.constant 0.000000e+00 : f32
    %39 = vector.broadcast %cst_24 : f32 to vector<8x128xf32>
    %40 = arith.maximumf %38, %39 : vector<8x128xf32>
    %41 = arith.truncf %40 : vector<8x128xf32> to vector<8x128xbf16>
    %c0_25 = arith.constant 0 : index
    %c0_26 = arith.constant 0 : index
    %42 = vector.load %arg6[%c0_25, %c0_26] : memref<128x128xbf16, #tpu.memory_space<vmem>>, vector<128x128xbf16>
    %cst_27 = arith.constant dense<0.000000e+00> : vector<8x128xf32>
    %43 = tpu.matmul %41, %42, %cst_27 {dimension_numbers = #tpu.dot_dimension_numbers<[1], [0], [0], [1], [0, 0, 1, 1], [], []>} : vector<8x128xbf16>, vector<128x128xbf16>, vector<8x128xf32> -> vector<8x128xf32>
    %44 = vector.broadcast %4 : vector<1x128xf32> to vector<8x128xf32>
    %45 = arith.addf %43, %44 : vector<8x128xf32>
    %46 = arith.addf %45, %33 : vector<8x128xf32>
    %cst_28 = arith.constant 0.000000e+00 : f32
    %47 = vector.broadcast %cst_28 : f32 to vector<8x128xf32>
    %48 = arith.maximumf %46, %47 : vector<8x128xf32>
    %49 = arith.truncf %48 : vector<8x128xf32> to vector<8x128xbf16>
    %c0_29 = arith.constant 0 : index
    %c0_30 = arith.constant 0 : index
    %50 = vector.load %arg7[%c0_29, %c0_30] : memref<128x128xbf16, #tpu.memory_space<vmem>>, vector<128x128xbf16>
    %cst_31 = arith.constant dense<0.000000e+00> : vector<8x128xf32>
    %51 = tpu.matmul %49, %50, %cst_31 {dimension_numbers = #tpu.dot_dimension_numbers<[1], [0], [0], [1], [0, 0, 1, 1], [], []>} : vector<8x128xbf16>, vector<128x128xbf16>, vector<8x128xf32> -> vector<8x128xf32>
    %52 = vector.broadcast %5 : vector<1x128xf32> to vector<8x128xf32>
    %53 = arith.addf %51, %52 : vector<8x128xf32>
    %cst_32 = arith.constant 0.000000e+00 : f32
    %54 = vector.broadcast %cst_32 : f32 to vector<8x128xf32>
    %55 = arith.subf %54, %53 : vector<8x128xf32>
    %56 = math.exp %55 : vector<8x128xf32>
    %cst_33 = arith.constant 1.000000e+00 : f32
    %57 = vector.broadcast %cst_33 : f32 to vector<8x128xf32>
    %58 = arith.addf %57, %56 : vector<8x128xf32>
    %59 = tpu.reciprocal %58 {approx = true} : vector<8x128xf32> -> vector<8x128xf32>
    %60 = tpu.iota {dimensions = array<i32: 1>} : vector<8x128xi32>
    %c4_i32 = arith.constant 4 : i32
    %61 = vector.broadcast %c4_i32 : i32 to vector<8x128xi32>
    %62 = arith.cmpi slt, %60, %61 : vector<8x128xi32>
    %cst_34 = arith.constant 0.000000e+00 : f32
    %63 = vector.broadcast %cst_34 : f32 to vector<8x128xf32>
    %64 = arith.select %62, %59, %63 : vector<8x128xi1>, vector<8x128xf32>
    %c0_35 = arith.constant 0 : index
    %c0_36 = arith.constant 0 : index
    %65 = vector.load %arg9[%c0_35, %c0_36] : memref<8x128xf32, #tpu.memory_space<vmem>>, vector<8x128xf32>
    tpu.vector_store %arg9[%c0_35, %c0_36], %64 {strides = array<i32>} : memref<8x128xf32, #tpu.memory_space<vmem>>, vector<8x128xf32>,
    return
  }
  func.func @transform_0(%arg0: i32) -> (i32, i32) {
    %c0_i32 = arith.constant 0 : i32
    %c0_i32_0 = arith.constant 0 : i32
    return %arg0, %c0_i32 : i32, i32
  }
  func.func @transform_1(%arg0: i32) -> (i32, i32) {
    %c0_i32 = arith.constant 0 : i32
    %c0_i32_0 = arith.constant 0 : i32
    %c0_i32_1 = arith.constant 0 : i32
    return %c0_i32, %c0_i32_0 : i32, i32
  }
  func.func @transform_2(%arg0: i32) -> (i32, i32) {
    %c0_i32 = arith.constant 0 : i32
    %c0_i32_0 = arith.constant 0 : i32
    %c0_i32_1 = arith.constant 0 : i32
    return %c0_i32, %c0_i32_0 : i32, i32
  }
  func.func @transform_3(%arg0: i32) -> (i32, i32) {
    %c0_i32 = arith.constant 0 : i32
    %c0_i32_0 = arith.constant 0 : i32
    %c0_i32_1 = arith.constant 0 : i32
    return %c0_i32, %c0_i32_0 : i32, i32
  }
  func.func @transform_4(%arg0: i32) -> (i32, i32) {
    %c0_i32 = arith.constant 0 : i32
    %c0_i32_0 = arith.constant 0 : i32
    %c0_i32_1 = arith.constant 0 : i32
    return %c0_i32, %c0_i32_0 : i32, i32
  }
  func.func @transform_5(%arg0: i32) -> (i32, i32) {
    %c0_i32 = arith.constant 0 : i32
    %c0_i32_0 = arith.constant 0 : i32
    %c0_i32_1 = arith.constant 0 : i32
    return %c0_i32, %c0_i32_0 : i32, i32
  }
  func.func @transform_6(%arg0: i32) -> (i32, i32) {
    %c0_i32 = arith.constant 0 : i32
    %c0_i32_0 = arith.constant 0 : i32
    %c0_i32_1 = arith.constant 0 : i32
    return %c0_i32, %c0_i32_0 : i32, i32
  }
  func.func @transform_7(%arg0: i32) -> (i32, i32) {
    %c0_i32 = arith.constant 0 : i32
    %c0_i32_0 = arith.constant 0 : i32
    %c0_i32_1 = arith.constant 0 : i32
    return %c0_i32, %c0_i32_0 : i32, i32
  }
  func.func @transform_8(%arg0: i32) -> (i32, i32) {
    %c0_i32 = arith.constant 0 : i32
    %c0_i32_0 = arith.constant 0 : i32
    return %arg0, %c0_i32 : i32, i32
  }
}

</mosaic_0001>

<bundles_post_ra>
// kernel: biomass_predictor.1
= control target key start
LH: loop header
LB: loop body
LE: loop exit
PB: predicated region body
PF: predicated region fallthrough
CT: control target
= control target key end

     0   :  { %13 = vsyncpa [#allocation3], 0  ;;  %s1372_s0 = inlined_call_operand.vmem [shape: f32[8,32], index: 0, kind: input, shape index: {}]   ;;  %s1373_s1 = inlined_call_operand.vmem [shape: bf16[32,128], index: 1, kind: input, shape index: {}]   ;;  %s1374_s2 = inlined_call_operand.hbm [shape: bf16[128,256], index: 2, kind: input, shape index: {}]   ;;  %s1375_s3 = inlined_call_operand.hbm [shape: bf16[256,128], index: 3, kind: input, shape index: {}]   ;;  %s1376_s4 = inlined_call_operand.hbm [shape: bf16[128,128], index: 4, kind: input, shape index: {}]   ;;  %s1377_s5 = inlined_call_operand.hbm [shape: bf16[128,128], index: 5, kind: input, shape index: {}]   ;;  %s1378_s6 = inlined_call_operand.hbm [shape: bf16[128,128], index: 6, kind: input, shape index: {}]   ;;  %s1379_s7 = inlined_call_operand.hbm [shape: f32[8,256], index: 7, kind: input, shape index: {}]   ;;  %s1380_s8 = inlined_call_operand.vmem [shape: f32[8,128], index: 8, kind: output, shape index: {}]  }
   0x1   :  { %14 = vsyncpa [#allocation5], 0 }
   0x2   :  { %15 = vsyncpa [#allocation8], 0 }
   0x3   :  { %16 = vsyncpa [#allocation11], 0  ;;  %s1236_s27 = smov [#allocation4]  }
   0x4   :  { %s38_s28 = sshll.u32 %s1236_s27, 4  ;;  %s39_s28 = int_to_ptr.vmem [resolvable:$true] %s38_s28 }
   0x5   :  { %s1116_s29 = scalar_lea.vmem %s39_s28, 2048  ;;  %p1121_p1 = scmp.lt.s32.totalorder %s39_s28, %s39_s28 }
   0x6   :  { %p1117_p0 = scmp.ne.s32.totalorder %s39_s28, %s1116_s29  ;;  %p1122_p2 = scmp.lt.s32.totalorder %s1116_s29, %s1116_s29 }
   0x8   :  { %p1123_p3 = por %p1122_p2, %p1121_p1 }
   0xa   :  { %p1124_p4 = pnand %p1123_p3, %p1117_p0 }
   0xc   :  { %1127 = shalt.err (!%p1124_p4)
}
   0xd   :  { %s1237_s30 = smov 64   ;;  %s1238_s9 = smov 4  }
   0xe   :  { %44 = dma.hbm_to_vmem [thread:$0]  %s1375_s3, 2048, %s39_s28, [#allocation5], %s1237_s30, %s1237_s30, %s1238_s9  }
   0xf   :  { %s1239_s12 = smov [#allocation7]   ;;  %s1240_s14 = smov [#allocation2]  }
  0x10   :  { %s62_s13 = sshll.u32 %s1239_s12, 4  ;;  %s26_s15 = sshll.u32 %s1240_s14, 4  ;;  %s63_s13 = int_to_ptr.vmem [resolvable:$true] %s62_s13  ;;  %s27_s15 = int_to_ptr.vmem [resolvable:$true] %s26_s15 }
  0x11   :  { %s1136_s16 = scalar_lea.vmem %s63_s13, 1024  ;;  %p1141_p6 = scmp.lt.s32.totalorder %s63_s13, %s63_s13 }
  0x12   :  { %p1137_p5 = scmp.ne.s32.totalorder %s63_s13, %s1136_s16  ;;  %p1142_p7 = scmp.lt.s32.totalorder %s1136_s16, %s1136_s16 }
  0x14   :  { %p1143_p8 = por %p1142_p7, %p1141_p6 }
  0x16   :  { %p1144_p9 = pnand %p1143_p8, %p1137_p5 }
  0x18   :  { %1147 = shalt.err (!%p1144_p9)
}
  0x19   :  { %68 = dma.hbm_to_vmem [thread:$0]  %s1377_s5, 1024, %s63_s13, [#allocation8], %s1237_s30, %s1237_s30, %s1238_s9  }
  0x1a   :  { %s1156_s3 = scalar_lea.vmem %s27_s15, 2048  ;;  %p1161_p11 = scmp.lt.s32.totalorder %s27_s15, %s27_s15 }
  0x1b   :  { %p1157_p10 = scmp.ne.s32.totalorder %s27_s15, %s1156_s3  ;;  %p1162_p12 = scmp.lt.s32.totalorder %s1156_s3, %s1156_s3 }
  0x1d   :  { %p1163_p13 = por %p1162_p12, %p1161_p11 }
  0x1f   :  { %p1164_p0 = pnand %p1163_p13, %p1157_p10 }
  0x21   :  { %1167 = shalt.err (!%p1164_p0)
}
  0x22   :  { %s1241_s19 = smov 128   ;;  %s1242_s20 = smov 8  }
  0x23   :  { %32 = dma.hbm_to_vmem [thread:$0]  %s1374_s2, 2048, %s27_s15, [#allocation3], %s1241_s19, %s1241_s19, %s1242_s20  }
  0x24   :  { %s1243_s23 = smov [#allocation6]   ;;  %s1244_s25 = smov [#allocation9]  }
  0x25   :  { %s50_s24 = sshll.u32 %s1243_s23, 4  ;;  %s74_s26 = sshll.u32 %s1244_s25, 4  ;;  %s51_s24 = int_to_ptr.vmem [resolvable:$true] %s50_s24  ;;  %s75_s26 = int_to_ptr.vmem [resolvable:$true] %s74_s26 }
  0x26   :  { %s1176_s5 = scalar_lea.vmem %s51_s24, 1024  ;;  %p1181_p2 = scmp.lt.s32.totalorder %s51_s24, %s51_s24 }
  0x27   :  { %p1177_p1 = scmp.ne.s32.totalorder %s51_s24, %s1176_s5  ;;  %p1182_p3 = scmp.lt.s32.totalorder %s1176_s5, %s1176_s5 }
  0x29   :  { %p1183_p4 = por %p1182_p3, %p1181_p2 }
  0x2b   :  { %p1184_p5 = pnand %p1183_p4, %p1177_p1 }
  0x2d   :  { %1187 = shalt.err (!%p1184_p5)
}
  0x2e   :  { %56 = dma.hbm_to_vmem [thread:$0]  %s1376_s4, 1024, %s51_s24, [#allocation5], %s1237_s30, %s1237_s30, %s1238_s9  }
  0x2f   :  { %s1196_s2 = scalar_lea.vmem %s75_s26, 1024  ;;  %p1201_p7 = scmp.lt.s32.totalorder %s75_s26, %s75_s26 }
  0x30   :  { %p1197_p6 = scmp.ne.s32.totalorder %s75_s26, %s1196_s2  ;;  %p1202_p8 = scmp.lt.s32.totalorder %s1196_s2, %s1196_s2 }
  0x32   :  { %p1203_p9 = por %p1202_p8, %p1201_p7 }
  0x34   :  { %p1204_p10 = pnand %p1203_p9, %p1197_p6 }
  0x36   :  { %1207 = shalt.err (!%p1204_p10)
}
  0x37   :  { %80 = dma.hbm_to_vmem [thread:$0]  %s1378_s6, 1024, %s75_s26, [#allocation8], %s1237_s30, %s1237_s30, %s1238_s9  }
  0x38   :  { %s1245_s11 = smov [#allocation10]  }
  0x39   :  { %s87_s12 = sshll.u32 %s1245_s11, 4  ;;  %s88_s12 = int_to_ptr.vmem [resolvable:$true] %s87_s12 }
  0x3a   :  { %s1216_s13 = scalar_lea.vmem %s88_s12, 256  ;;  %p1221_p12 = scmp.lt.s32.totalorder %s88_s12, %s88_s12 }
  0x3b   :  { %p1217_p11 = scmp.ne.s32.totalorder %s88_s12, %s1216_s13  ;;  %p1222_p13 = scmp.lt.s32.totalorder %s1216_s13, %s1216_s13 }
  0x3d   :  { %p1223_p0 = por %p1222_p13, %p1221_p12 }
  0x3f   :  { %p1224_p1 = pnand %p1223_p0, %p1217_p11 }
  0x41   :  { %1227 = shalt.err (!%p1224_p1)
}
  0x42   :  { %90 = dma.hbm_to_vmem [thread:$0]  %s1379_s7, 256, %s88_s12, [#allocation11]  }
  0x43   :  { %1228 = dma.done.wait [#allocation3], 2048  }
  0x44   :  { %1229 = vsyncadd [#allocation3], 4294965248 }
  0x45   :  { %1230 = dma.done.wait [#allocation5], 3072  }
  0x46   :  { %1231 = vsyncadd [#allocation5], 4294964224 }
  0x47   :  { %1232 = dma.done.wait [#allocation8], 2048  }
  0x48   :  { %1233 = vsyncadd [#allocation8], 4294965248 }
  0x49   :  { %1234 = dma.done.wait [#allocation11], 256  }
  0x4a   :  { %1235 = vsyncadd [#allocation11], 4294967040  ;;  %v1246_v0 = vmov 0.0   ;;  %vm1247_vm0 = vmmov 0   ;;  %v1036_v1 = vld [vmem:[%s1373_s1 + $0x8] sm:$0xff]   ;;  %v1037_v2 = vld [vmem:[%s1373_s1] sm:$0xff]   ;;  %v203_v55 = vlaneseq }
  0x4b   :  { %955 = vmatprep.subr.bf16.mxu0 %v1246_v0  ;;  %959 = vmatprep.mubr.msk.bf16.mxu0 %vm1247_vm0, %v1246_v0  ;;  %v117_v3 = vld [vmem:[%s1372_s0] sm:$0xff]  ;;  %v1038_v4 = vld [vmem:[#allocation2 + $0x74] ss:$8 sps:$4 sm:$0xff]   ;;  %v1040_v5 = vld [vmem:[#allocation2 + $0x70] ss:$8 sps:$4 sm:$0xff]   ;;  %vm135_vm1 = vcmask 261120  }
  0x4c   :  { %956 = vmatpush3.bf16.msra.mxu0 %v1036_v1  ;;  %v1041_v6 = vld [vmem:[#allocation2 + $0x64] ss:$8 sps:$4 sm:$0xff]   ;;  %v118_v7 = vpack.c.bf16 %v117_v3, %v117_v3  ;;  %293 = vmatprep.subr.bf16.mxu1 %v1038_v4  ;;  %v1043_v8 = vld [vmem:[#allocation2 + $0x60] ss:$8 sps:$4 sm:$0xff]   ;;  %v1044_v9 = vld [vmem:[#allocation2 + $0x54] ss:$8 sps:$4 sm:$0xff]  }
  0x4d   :  { %957 = vmatprep.subr.bf16.mxu0 %v1246_v0  ;;  %294 = vmatpush1.bf16.msra.mxu1 %v1040_v5  ;;  %v1046_v10 = vld [vmem:[#allocation2 + $0x50] ss:$8 sps:$4 sm:$0xff]   ;;  %v1047_v11 = vld [vmem:[#allocation2 + $0x44] ss:$8 sps:$4 sm:$0xff]   ;;  %v1049_v12 = vld [vmem:[#allocation2 + $0x40] ss:$8 sps:$4 sm:$0xff]  }
  0x4e   :  { %295 = vmatprep.subr.bf16.mxu1 %v1041_v6  ;;  %v1050_v13 = vld [vmem:[#allocation2 + $0x34] ss:$8 sps:$4 sm:$0xff]   ;;  %v1052_v14 = vld [vmem:[#allocation2 + $0x30] ss:$8 sps:$4 sm:$0xff]   ;;  %v1053_v15 = vld [vmem:[#allocation2 + $0x24] ss:$8 sps:$4 sm:$0xff]  }
  0x4f   :  { %v1248_v16 = vmov 0   ;;  %v1055_v17 = vld [vmem:[#allocation2 + $0x20] ss:$8 sps:$4 sm:$0xff]   ;;  %v1056_v18 = vld [vmem:[#allocation2 + $0x14] ss:$8 sps:$4 sm:$0xff]   ;;  %v204_v56 = vshrl.u32 %v203_v55, 7 }
  0x50   :  { %958 = vmatpush3.bf16.msra.mxu0 %v1037_v2  ;;  %325 = vmatprep.mubr.bf16.mxu1 %v1248_v16  ;;  %v1058_v19 = vld [vmem:[#allocation2 + $0x10] ss:$8 sps:$4 sm:$0xff]   ;;  %v1059_v20 = vld [vmem:[#allocation2 + $0x4] ss:$8 sps:$4 sm:$0xff]   ;;  %v1061_v21 = vld [vmem:[#allocation2] ss:$8 sps:$4 sm:$0xff]  }
  0x51   :  { %296 = vmatpush1.bf16.msra.mxu1 %v1043_v8  ;;  %v1062_v22 = vld [vmem:[#allocation4 + $0x78] sm:$0xff]   ;;  %v1064_v24 = vld [vmem:[#allocation4 + $0x70] sm:$0xff]   ;;  %v1066_v26 = vld [vmem:[#allocation4 + $0x68] sm:$0xff]   ;;  %v205_v57 = vsub.s32 0, %v204_v56  ;;  %v209_v59 = vsub.s32 1, %v204_v56 }
  0x52   :  { %297 = vmatprep.subr.bf16.mxu1 %v1044_v9  ;;  %v1063_v23 = vld [vmem:[#allocation4 + $0x38] sm:$0xff]   ;;  %906 = vmatprep.subr.bf16.mxu0 %v1062_v22  ;;  %v1065_v25 = vld [vmem:[#allocation4 + $0x30] sm:$0xff]   ;;  %v1067_v27 = vld [vmem:[#allocation4 + $0x28] sm:$0xff]  }
  0x53   :  { %960 = vmatmul.mubr.msk.bf16.vlgmr.msra.gmra.mxu0 %vm135_vm1, %v118_v7  ;;  %v1068_v28 = vld [vmem:[#allocation4 + $0x60] sm:$0xff]   ;;  %v1070_v30 = vld [vmem:[#allocation4 + $0x58] sm:$0xff]   ;;  %v1072_v32 = vld [vmem:[#allocation4 + $0x50] sm:$0xff]  }
  0x54   :  { %907 = vmatpush3.bf16.msra.mxu0 %v1063_v23  ;;  %v1069_v29 = vld [vmem:[#allocation4 + $0x20] sm:$0xff]   ;;  %v1071_v31 = vld [vmem:[#allocation4 + $0x18] sm:$0xff]   ;;  %v1073_v33 = vld [vmem:[#allocation4 + $0x10] sm:$0xff]  }
  0x55   :  { %298 = vmatpush1.bf16.msra.mxu1 %v1046_v10  ;;  %908 = vmatprep.subr.bf16.mxu0 %v1064_v24  ;;  %v110_v34 = vld [vmem:[#allocation10] ss:$0 sm:$0xff]  ;;  %v1074_v46 = vld [vmem:[#allocation4 + $0x48] sm:$0xff]   ;;  %v1078_v50 = vld [vmem:[#allocation6 + $0x38] sm:$0xff]  }
  0x56   :  { %299 = vmatprep.subr.bf16.mxu1 %v1047_v11  ;;  %v1075_v47 = vld [vmem:[#allocation4 + $0x8] sm:$0xff]   ;;  %v1076_v48 = vld [vmem:[#allocation4 + $0x40] sm:$0xff]   ;;  %v1079_v51 = vld [vmem:[#allocation6 + $0x30] sm:$0xff]  }
  0x57   :  { %v1077_v49 = vld [vmem:[#allocation4] sm:$0xff]   ;;  %v1080_v52 = vld [vmem:[#allocation6 + $0x28] sm:$0xff]   ;;  %v1082_v54 = vld [vmem:[#allocation6 + $0x18] sm:$0xff]  }
  0x58   :  { %909 = vmatpush3.bf16.msra.mxu0 %v1065_v25  ;;  %v1081_v53 = vld [vmem:[#allocation6 + $0x20] sm:$0xff]   ;;  %v1083_v9 = vld [vmem:[#allocation6 + $0x10] sm:$0xff]   ;;  %v1084_v10 = vld [vmem:[#allocation6 + $0x8] sm:$0xff]  }
  0x59   :  { %300 = vmatpush1.bf16.msra.mxu1 %v1049_v12  ;;  %910 = vmatprep.subr.bf16.mxu0 %v1066_v26  ;;  %v112_v58 = vld [vmem:[#allocation10 + $0x1] ss:$8 sm:$0x3]  ;;  %v1086_v12 = vld [vmem:[#allocation7 + $0x38] sm:$0xff]  }
  0x5a   :  { %301 = vmatprep.subr.bf16.mxu1 %v1050_v13  ;;  %v206_v60 = vrot.slane %v112_v58, %v205_v57  ;;  %v210_v61 = vrot.slane %v112_v58, %v209_v59  ;;  %v1085_v11 = vld [vmem:[#allocation6] sm:$0xff]   ;;  %v1087_v13 = vld [vmem:[#allocation7 + $0x30] sm:$0xff]   ;;  %v1090_v16 = vld [vmem:[#allocation7 + $0x18] sm:$0xff]  }
  0x5c   :  { %911 = vmatpush3.bf16.msra.mxu0 %v1067_v27  ;;  %v1092_v27 = vld [vmem:[#allocation7 + $0x8] sm:$0xff]  }
  0x5d   :  { %302 = vmatpush1.bf16.msra.mxu1 %v1052_v14  ;;  %912 = vmatprep.subr.bf16.mxu0 %v1068_v28  ;;  %v1088_v14 = vld [vmem:[#allocation7 + $0x28] sm:$0xff]   ;;  %v1093_v28 = vld [vmem:[#allocation7] sm:$0xff]  }
  0x5e   :  { %303 = vmatprep.subr.bf16.mxu1 %v1053_v15  ;;  %v1089_v15 = vld [vmem:[#allocation7 + $0x20] sm:$0xff]  }
  0x60   :  { %913 = vmatpush3.bf16.msra.mxu0 %v1069_v29  ;;  %v1094_v29 = vld [vmem:[#allocation9 + $0x38] sm:$0xff]  }
  0x61   :  { %304 = vmatpush1.bf16.msra.mxu1 %v1055_v17  ;;  %914 = vmatprep.subr.bf16.mxu0 %v1070_v30  ;;  %v1091_v17 = vld [vmem:[#allocation7 + $0x10] sm:$0xff]  }
  0x62   :  { %305 = vmatprep.subr.bf16.mxu1 %v1056_v18  ;;  %v1095_v30 = vld [vmem:[#allocation9 + $0x30] sm:$0xff]  }
  0x64   :  { %915 = vmatpush3.bf16.msra.mxu0 %v1071_v31  ;;  %v1096_v31 = vld [vmem:[#allocation9 + $0x28] sm:$0xff]  }
  0x65   :  { %306 = vmatpush1.bf16.msra.mxu1 %v1058_v19  ;;  %916 = vmatprep.subr.bf16.mxu0 %v1072_v32  ;;  %v113_v19 = vld [vmem:[#allocation10 + $0x2] ss:$0 sm:$0xff] }
  0x66   :  { %307 = vmatprep.subr.bf16.mxu1 %v1059_v20  ;;  %v1097_v32 = vld [vmem:[#allocation9 + $0x20] sm:$0xff]  }
  0x68   :  { %917 = vmatpush3.bf16.msra.mxu0 %v1073_v33  ;;  %v1098_v33 = vld [vmem:[#allocation9 + $0x18] sm:$0xff]  }
  0x69   :  { %308 = vmatpush1.bf16.msra.mxu1 %v1061_v21  ;;  %918 = vmatprep.subr.bf16.mxu0 %v1074_v46 }
  0x6a   :  { %963 = vmatprep.subr.bf16.mxu1 %v1246_v0 }
  0x6c   :  { %919 = vmatpush3.bf16.msra.mxu0 %v1075_v47 }
  0x6d   :  { %920 = vmatprep.subr.bf16.mxu0 %v1076_v48 }
  0x70   :  { %921 = vmatpush3.bf16.msra.mxu0 %v1077_v49 }
  0x71   :  { %983 = vmatprep.subr.bf16.mxu0 %v1246_v0 }
 0x113   :  { %v173_v35 = vpop.f32.mrf.mxu0 }
 0x114   :  { %v174_v36 = vadd.f32 %v173_v35, %v110_v34  ;;  %v1099_v34 = vld [vmem:[#allocation9 + $0x10] sm:$0xff]   ;;  %v114_v35 = vld [vmem:[#allocation10 + $0x3] ss:$0 sm:$0xff] }
 0x115   :  { %v961_v37 = vpop.f32.mrf.mxu0 }
 0x116   :  { %v180_v38 = vmin.f32 %v174_v36, 0.0  ;;  %vm179_vm2 = vcmp.gt.f32.partialorder %v174_v36, 0.0 }
 0x117   :  { %v176_v39 = vpop.f32.mrf.mxu0 }
 0x118   :  { %v181_v40 = vmul.f32 1.442695, %v180_v38 }
 0x119   :  { %v962_v41 = vpop.f32.mrf.mxu0 }
 0x11a   :  { %1102 = vpow2.f32 %v181_v40 }
 0x127   :  { %v1103_v42 = vpop.eup %1102 }
 0x128   :  { %v846_v43 = vadd.f32 -1.0, %v1103_v42 }
 0x12a   :  { %v184_v44 = vsel %vm179_vm2, %v174_v36, %v846_v43  ;;  %v1100_v43 = vld [vmem:[#allocation9 + $0x8] sm:$0xff]  }
 0x12b   :  { %v185_v45 = vpack.c.bf16 %v184_v44, %v184_v44  ;;  %v1101_v44 = vld [vmem:[#allocation9] sm:$0xff]  }
 0x12d   :  { %326 = vmatmul.mubr.bf16.vlgmr.msra.gmra.mxu1 %v185_v45  ;;  %v115_v45 = vld [vmem:[#allocation10 + $0x4] ss:$0 sm:$0xff] }
 0x12e   :  { %979 = vmatprep.mubr.msk.bf16.mxu1 %vm1247_vm0, %v1246_v0  ;;  %964 = vmatpush3.bf16.msra.mxu1 %v1078_v50 }
 0x12f   :  { %965 = vmatprep.subr.bf16.mxu1 %v1246_v0 }
 0x132   :  { %966 = vmatpush3.bf16.msra.mxu1 %v1079_v51 }
 0x133   :  { %967 = vmatprep.subr.bf16.mxu1 %v1246_v0 }
 0x136   :  { %968 = vmatpush3.bf16.msra.mxu1 %v1080_v52 }
 0x137   :  { %969 = vmatprep.subr.bf16.mxu1 %v1246_v0 }
 0x13a   :  { %970 = vmatpush3.bf16.msra.mxu1 %v1081_v53 }
 0x13b   :  { %971 = vmatprep.subr.bf16.mxu1 %v1246_v0 }
 0x13e   :  { %972 = vmatpush3.bf16.msra.mxu1 %v1082_v54  ;;  %v116_v54 = vld [vmem:[#allocation10 + $0x5] ss:$0 sm:$0xff] }
 0x13f   :  { %973 = vmatprep.subr.bf16.mxu1 %v1246_v0 }
 0x142   :  { %974 = vmatpush3.bf16.msra.mxu1 %v1083_v9 }
 0x143   :  { %975 = vmatprep.subr.bf16.mxu1 %v1246_v0 }
 0x146   :  { %976 = vmatpush3.bf16.msra.mxu1 %v1084_v10 }
 0x147   :  { %977 = vmatprep.subr.bf16.mxu1 %v1246_v0 }
 0x14a   :  { %978 = vmatpush3.bf16.msra.mxu1 %v1085_v11 }
 0x14b   :  { %1003 = vmatprep.subr.bf16.mxu1 %v1246_v0 }
 0x1ed   :  { %v327_v62 = vpop.f32.mrf.mxu1 }
 0x1ee   :  { %v328_v63 = vadd.f32 %v327_v62, %v206_v60 }
 0x1ef   :  { %v329_v1 = vpop.f32.mrf.mxu1 }
 0x1f0   :  { %v330_v2 = vadd.f32 %v329_v1, %v210_v61  ;;  %v334_v3 = vmax.f32 %v328_v63, 0.0  ;;  %v831_v1 = vand.u32 127, %v203_v55 }
 0x1f1   :  { %v331_v4 = vpop.f32.mrf.mxu1 }
 0x1f2   :  { %v335_v5 = vmax.f32 %v330_v2, 0.0  ;;  %v336_v8 = vpack.c.bf16 %v334_v3, %v334_v3  ;;  %vm832_vm3 = vcmp.lt.s32.totalorder %v831_v1, 4 }
 0x1f3   :  { %v332_v6 = vpop.f32.mrf.mxu1 }
 0x1f4   :  { %v337_v7 = vpack.c.bf16 %v335_v5, %v335_v5 }
 0x1f6   :  { %498 = vmatprep.mubr.bf16.mxu0 %v337_v7 }
 0x1f7   :  { %499 = vmatmul.mubr.bf16.vlgmr.msra.gmra.mxu0 %v336_v8 }
 0x1f8   :  { %999 = vmatprep.mubr.msk.bf16.mxu0 %vm1247_vm0, %v1246_v0  ;;  %984 = vmatpush3.bf16.msra.mxu0 %v1086_v12 }
 0x1f9   :  { %985 = vmatprep.subr.bf16.mxu0 %v1246_v0 }
 0x1fc   :  { %986 = vmatpush3.bf16.msra.mxu0 %v1087_v13 }
 0x1fd   :  { %987 = vmatprep.subr.bf16.mxu0 %v1246_v0 }
 0x200   :  { %988 = vmatpush3.bf16.msra.mxu0 %v1088_v14 }
 0x201   :  { %989 = vmatprep.subr.bf16.mxu0 %v1246_v0 }
 0x204   :  { %990 = vmatpush3.bf16.msra.mxu0 %v1089_v15 }
 0x205   :  { %991 = vmatprep.subr.bf16.mxu0 %v1246_v0 }
 0x208   :  { %992 = vmatpush3.bf16.msra.mxu0 %v1090_v16 }
 0x209   :  { %993 = vmatprep.subr.bf16.mxu0 %v1246_v0 }
 0x20c   :  { %994 = vmatpush3.bf16.msra.mxu0 %v1091_v17 }
 0x20d   :  { %995 = vmatprep.subr.bf16.mxu0 %v1246_v0 }
 0x210   :  { %996 = vmatpush3.bf16.msra.mxu0 %v1092_v27 }
 0x211   :  { %997 = vmatprep.subr.bf16.mxu0 %v1246_v0 }
 0x214   :  { %998 = vmatpush3.bf16.msra.mxu0 %v1093_v28 }
 0x2b7   :  { %v922_v18 = vpop.f32.mrf.mxu0 }
 0x2b9   :  { %v923_v20 = vpop.f32.mrf.mxu0 }
 0x2ba   :  { %v924_v21 = vadd.f32 %v923_v20, %v922_v18 }
 0x2bb   :  { %v925_v22 = vpop.f32.mrf.mxu0 }
 0x2bc   :  { %v501_v23 = vadd.f32 %v924_v21, %v113_v19 }
 0x2bd   :  { %v926_v24 = vpop.f32.mrf.mxu0 }
 0x2be   :  { %v506_v25 = vmax.f32 %v501_v23, 0.0 }
 0x2c0   :  { %v507_v26 = vpack.c.bf16 %v506_v25, %v506_v25 }
 0x2c2   :  { %980 = vmatmul.mubr.bf16.vlgmr.msra.gmra.mxu1 %v507_v26 }
 0x2c3   :  { %1019 = vmatprep.mubr.msk.bf16.mxu1 %vm1247_vm0, %v1246_v0  ;;  %1004 = vmatpush3.bf16.msra.mxu1 %v1094_v29 }
 0x2c4   :  { %1005 = vmatprep.subr.bf16.mxu1 %v1246_v0 }
 0x2c7   :  { %1006 = vmatpush3.bf16.msra.mxu1 %v1095_v30 }
 0x2c8   :  { %1007 = vmatprep.subr.bf16.mxu1 %v1246_v0 }
 0x2cb   :  { %1008 = vmatpush3.bf16.msra.mxu1 %v1096_v31 }
 0x2cc   :  { %1009 = vmatprep.subr.bf16.mxu1 %v1246_v0 }
 0x2cf   :  { %1010 = vmatpush3.bf16.msra.mxu1 %v1097_v32 }
 0x2d0   :  { %1011 = vmatprep.subr.bf16.mxu1 %v1246_v0 }
 0x2d3   :  { %1012 = vmatpush3.bf16.msra.mxu1 %v1098_v33 }
 0x2d4   :  { %1013 = vmatprep.subr.bf16.mxu1 %v1246_v0 }
 0x2d7   :  { %1014 = vmatpush3.bf16.msra.mxu1 %v1099_v34 }
 0x2d8   :  { %1015 = vmatprep.subr.bf16.mxu1 %v1246_v0 }
 0x2db   :  { %1016 = vmatpush3.bf16.msra.mxu1 %v1100_v43 }
 0x2dc   :  { %1017 = vmatprep.subr.bf16.mxu1 %v1246_v0 }
 0x2df   :  { %1018 = vmatpush3.bf16.msra.mxu1 %v1101_v44 }
 0x382   :  { %v606_v36 = vpop.f32.mrf.mxu1 }
 0x383   :  { %v607_v37 = vadd.f32 %v606_v36, %v114_v35 }
 0x384   :  { %v981_v38 = vpop.f32.mrf.mxu1 }
 0x385   :  { %v612_v39 = vmax.f32 %v607_v37, 0.0 }
 0x386   :  { %v609_v40 = vpop.f32.mrf.mxu1 }
 0x387   :  { %v613_v41 = vpack.c.bf16 %v612_v39, %v612_v39 }
 0x388   :  { %v982_v42 = vpop.f32.mrf.mxu1 }
 0x389   :  { %1000 = vmatmul.mubr.bf16.vlgmr.msra.gmra.mxu0 %v613_v41 }
 0x449   :  { %v712_v46 = vpop.f32.mrf.mxu0 }
 0x44a   :  { %v713_v47 = vadd.f32 %v712_v46, %v115_v45 }
 0x44b   :  { %v1001_v48 = vpop.f32.mrf.mxu0 }
 0x44c   :  { %v718_v49 = vadd.f32 %v713_v47, %v506_v25 }
 0x44d   :  { %v715_v50 = vpop.f32.mrf.mxu0 }
 0x44e   :  { %v719_v51 = vmax.f32 %v718_v49, 0.0 }
 0x44f   :  { %v1002_v52 = vpop.f32.mrf.mxu0 }
 0x450   :  { %v720_v53 = vpack.c.bf16 %v719_v51, %v719_v51 }
 0x452   :  { %1020 = vmatmul.mubr.bf16.vlgmr.msra.gmra.mxu1 %v720_v53 }
 0x512   :  { %v819_v56 = vpop.f32.mrf.mxu1 }
 0x513   :  { %v820_v57 = vadd.f32 %v819_v56, %v116_v54 }
 0x514   :  { %v1021_v58 = vpop.f32.mrf.mxu1 }
 0x515   :  { %v825_v59 = vsub.f32 0.0, %v820_v57 }
 0x516   :  { %v822_v60 = vpop.f32.mrf.mxu1 }
 0x517   :  { %v826_v61 = vmul.f32 1.442695, %v825_v59 }
 0x518   :  { %v1022_v0 = vpop.f32.mrf.mxu1 }
 0x519   :  { %1104 = vpow2.f32 %v826_v61 }
 0x526   :  { %v1105_v62 = vpop.eup %1104 }
 0x527   :  { %v828_v63 = vadd.f32 1.0, %v1105_v62 }
 0x529   :  { %1106 = vrcp.f32 %v828_v63 }
 0x536   :  { %v1107_v2 = vpop.eup %1106 }
 0x537   :  { %v833_v3 = vsel %vm832_vm3, %v1107_v2, 0.0 }
 0x538   :  { %834 = vst [vmem:[%s1380_s8] sm:$0xff] %v833_v3 }
 0x539   :  { %839 = vsyncpa [#allocation3], 1 }
 0x53a   :  { %840 = vsyncpa [#allocation5], 1 }
 0x53b   :  { %841 = vsyncpa [#allocation8], 1 }
 0x53c   :  { %842 = vsyncpa [#allocation11], 1 }

</bundles_post_ra>
